<compile_context>
chip_gen: v7x
topology: tpu7x:2x2x1
jax: 0.10.0
libtpu: 0.0.40
codegen_flags: <defaults>
</compile_context>

<pallas_src>
import jax
import jax.numpy as jnp
from jax.experimental import pallas as pl
from jax.experimental.pallas import tpu as pltpu

_EPS = 1e-5
_NEG_SLOPE = 0.01                  # nn.LeakyReLU default
_MAX_TILE_N = 4096                 # rows per streamed batch tile
_CACHE_BYTES = 12 * 1024 * 1024    # VMEM budget for caching h across the two passes
_VMEM_LIMIT = 32 * 1024 * 1024     # safe on v5e/v6e/v7x (default on v6e/v7x, raises v5e)


def _round_up(x, m):
    return (x + m - 1) // m * m


def _make_kernel(cache_h: bool):
    def kernel(n_ref,                      # SMEM scalar prefetch: (1,) int32 true batch size
               mol_ref, prot_ref,          # (tile_n, d_mol) / (tile_n, d_prot), bf16
               w1_ref, b1_ref,             # (d_in, H) bf16 / (1, H) f32
               gw2_ref,                    # (1, H) f32 : gamma * w2^T
               c0_ref,                     # SMEM (1,) f32 : beta.w2 + b2
               o_ref,                      # (1, tile_n) f32, lane-dense output tile
               sum_ref, sq_ref,            # VMEM (1, H) f32 scratch (full-batch stats)
               *cache_refs):               # optional VMEM (num_tiles, tile_n, H) f32
        p = pl.program_id(0)               # 0: accumulate BN stats, 1: apply + linear2 + sigmoid
        i = pl.program_id(1)               # batch-tile index
        tile_n = mol_ref.shape[0]

        def compute_h():
            # Single K=d_in MXU dot on the in-VMEM concatenated tile (bf16 in, f32 acc).
            x = jnp.concatenate([mol_ref[...], prot_ref[...]], axis=1)
            h = jnp.dot(x, w1_ref[...], preferred_element_type=jnp.float32) + b1_ref[...]
            return jnp.where(h > 0, h, _NEG_SLOPE * h)

        @pl.when(p == 0)
        def _stats_pass():
            @pl.when(i == 0)
            def _init():
                sum_ref[...] = jnp.zeros_like(sum_ref)
                sq_ref[...] = jnp.zeros_like(sq_ref)

            h = compute_h()
            if cache_h:
                cache_refs[0][i] = h
            # Mask padded rows so batch statistics use exactly the true batch size.
            row = i * tile_n + jax.lax.broadcasted_iota(jnp.int32, h.shape, 0)
            hm = jnp.where(row < n_ref[0], h, 0.0)
            sum_ref[...] += jnp.sum(hm, axis=0, keepdims=True)
            sq_ref[...] += jnp.sum(hm * hm, axis=0, keepdims=True)
            # No o_ref write in pass 0 (output block index is pinned, no writeback).

        @pl.when(p == 1)
        def _apply_pass():
            h = cache_refs[0][i] if cache_h else compute_h()          # (tile_n, H) f32
            n_f = n_ref[0].astype(jnp.float32)
            mean = sum_ref[...] / n_f                                  # (1, H)
            var = jnp.maximum(sq_ref[...] / n_f - mean * mean, 0.0)    # biased var (PyTorch train)
            w2s = gw2_ref[...] * jax.lax.rsqrt(var + _EPS)             # gamma*invstd*w2^T, (1, H)
            bias = c0_ref[0] - jnp.sum(mean * w2s, axis=1, keepdims=True)   # (1, 1)
            # Lane-dense logits: contract hidden dims of (1,H) and (tile_n,H) -> (1, tile_n).
            logit = jax.lax.dot_general(
                w2s, h, (((1,), (1,)), ((), ())),
                preferred_element_type=jnp.float32) + bias
            o_ref[...] = 1.0 / (1.0 + jnp.exp(-logit))

    return kernel


def baseline_forward(molecule_embedding, protein_embedding, params):
    w1, b1, gamma, beta, w2, b2 = params
    n, d_mol = molecule_embedding.shape
    d_prot = protein_embedding.shape[1]
    d_in, hidden = w1.shape

    # bf16 streaming of the dominant arrays; f32 everywhere that accumulates.
    mol = molecule_embedding.astype(jnp.bfloat16)
    prot = protein_embedding.astype(jnp.bfloat16)
    w1_bf = w1.astype(jnp.bfloat16)
    b1_f = b1.reshape(1, hidden).astype(jnp.float32)
    gw2 = (gamma.reshape(1, hidden) * w2.reshape(1, hidden)).astype(jnp.float32)   # gamma*w2^T
    c0 = (jnp.dot(beta.reshape(1, hidden), w2.reshape(hidden, 1))
          + b2.reshape(1, 1)).reshape(1).astype(jnp.float32)                       # beta.w2 + b2

    tile_n = min(_MAX_TILE_N, _round_up(n, 128))     # multiple of 128 -> lane-dense out blocks
    num_tiles = pl.cdiv(n, tile_n)
    n_pad = num_tiles * tile_n
    if n_pad != n:
        pad = ((0, n_pad - n), (0, 0))
        mol = jnp.pad(mol, pad)
        prot = jnp.pad(prot, pad)

    # Cache h across the two passes when it fits in VMEM (accounting for lane padding).
    cache_h = n_pad * _round_up(hidden, 128) * 4 <= _CACHE_BYTES

    if cache_h:
        # Pass 1 reads h from VMEM: pin mol/prot to block 0 so they are not re-streamed.
        act_map = lambda p, i, n_s: ((1 - p) * i, 0)
    else:
        act_map = lambda p, i, n_s: (i, 0)
    const_map = lambda p, i, n_s: (0, 0)

    in_specs = [
        pl.BlockSpec((tile_n, d_mol), act_map),              # mol tile (bf16)
        pl.BlockSpec((tile_n, d_prot), act_map),             # prot tile (bf16)
        pl.BlockSpec((d_in, hidden), const_map),             # W1 (VMEM-resident)
        pl.BlockSpec((1, hidden), const_map),                # b1
        pl.BlockSpec((1, hidden), const_map),                # gamma * w2^T
        pl.BlockSpec(memory_space=pltpu.SMEM),               # c0 scalar in SMEM
    ]
    # Output block index is constant (0) during pass 0 (no writebacks), i during pass 1.
    out_spec = pl.BlockSpec((1, tile_n), lambda p, i, n_s: (0, p * i))

    scratch = [pltpu.VMEM((1, hidden), jnp.float32),         # sum of h
               pltpu.VMEM((1, hidden), jnp.float32)]         # sum of h^2
    if cache_h:
        scratch.append(pltpu.VMEM((num_tiles, tile_n, hidden), jnp.float32))

    grid_spec = pltpu.PrefetchScalarGridSpec(
        num_scalar_prefetch=1,
        grid=(2, num_tiles),              # (pass, batch tile); pass 0 fully precedes pass 1
        in_specs=in_specs,
        out_specs=out_spec,
        scratch_shapes=scratch,
    )

    # Both axes must stay "arbitrary": BN needs sequentially accumulated full-batch stats.
    out = pl.pallas_call(
        _make_kernel(cache_h),
        out_shape=jax.ShapeDtypeStruct((1, n_pad), jnp.float32),
        grid_spec=grid_spec,
        compiler_params=pltpu.CompilerParams(
            dimension_semantics=("arbitrary", "arbitrary"),
            vmem_limit_bytes=_VMEM_LIMIT),
    )(jnp.array([n], dtype=jnp.int32), mol, prot, w1_bf, b1_f, gw2, c0)
    return out[0, :n].reshape(n, 1)


def baseline_reference(mol, prot, params):
    # Pure-JAX reference mirroring the PyTorch module (training-mode BatchNorm).
    w1, b1, gamma, beta, w2, b2 = params
    x = jnp.concatenate([mol, prot], axis=-1).astype(jnp.float32)
    h = jnp.dot(x, w1, precision=jax.lax.Precision.HIGHEST) + b1
    h = jnp.where(h > 0, h, _NEG_SLOPE * h)
    mean = jnp.mean(h, axis=0, keepdims=True)
    var = jnp.mean((h - mean) ** 2, axis=0, keepdims=True)
    hn = (h - mean) * jax.lax.rsqrt(var + _EPS) * gamma + beta
    z = jnp.dot(hn, w2, precision=jax.lax.Precision.HIGHEST) + b2
    return 1.0 / (1.0 + jnp.exp(-z))


def init_params(key, d_mol, d_prot, hidden):
    d_in = d_mol + d_prot
    k1, k2, k3, k4 = jax.random.split(key, 4)
    lim1 = 1.0 / jnp.sqrt(d_in)
    lim2 = 1.0 / jnp.sqrt(hidden)
    w1 = jax.random.uniform(k1, (d_in, hidden), jnp.float32, -lim1, lim1)
    b1 = jax.random.uniform(k2, (1, hidden), jnp.float32, -lim1, lim1)
    gamma = jnp.ones((1, hidden), jnp.float32)   # BatchNorm1d default weight
    beta = jnp.zeros((1, hidden), jnp.float32)   # BatchNorm1d default bias
    w2 = jax.random.uniform(k3, (hidden, 1), jnp.float32, -lim2, lim2)
    b2 = jax.random.uniform(k4, (1, 1), jnp.float32, -lim2, lim2)
    return (w1, b1, gamma, beta, w2, b2)


if __name__ == "__main__":
    d_mol, d_prot, hidden = 16, 16, 32
    batch = 8

    key = jax.random.PRNGKey(0)
    k_mol, k_prot, k_params, k_m2, k_p2 = jax.random.split(key, 5)
    mol = jax.random.normal(k_mol, (batch, d_mol), jnp.float32)
    prot = jax.random.normal(k_prot, (batch, d_prot), jnp.float32)
    params = init_params(k_params, d_mol, d_prot, hidden)

    out = baseline_forward(mol, prot, params)
    jax.block_until_ready(out)
    assert out.shape == (batch, 1)
    ref = baseline_reference(mol, prot, params)
    assert float(jnp.max(jnp.abs(out - ref))) < 5e-3

    # Uneven batch exercises the padded-row masking of the BatchNorm statistics.
    batch2 = 13
    mol2 = jax.random.normal(k_m2, (batch2, d_mol), jnp.float32)
    prot2 = jax.random.normal(k_p2, (batch2, d_prot), jnp.float32)
    out2 = baseline_forward(mol2, prot2, params)
    jax.block_until_ready(out2)
    assert out2.shape == (batch2, 1)
    ref2 = baseline_reference(mol2, prot2, params)
    assert float(jnp.max(jnp.abs(out2 - ref2))) < 5e-3

    print("KERNEL_OK")
</pallas_src>

<mosaic_0001>
module attributes {stable_mosaic.version = 11 : i64} {
  func.func @kernel(%arg0: i32, %arg1: i32, %arg2: memref<1xi32, #tpu.memory_space<smem>>, %arg3: memref<128x16xbf16, #tpu.memory_space<vmem>>, %arg4: memref<128x16xbf16, #tpu.memory_space<vmem>>, %arg5: memref<32x32xbf16, #tpu.memory_space<vmem>>, %arg6: memref<1x32xf32, #tpu.memory_space<vmem>>, %arg7: memref<1x32xf32, #tpu.memory_space<vmem>>, %arg8: memref<1xf32, #tpu.memory_space<smem>>, %arg9: memref<1x128xf32, #tpu.memory_space<vmem>>, %arg10: memref<1x32xf32, #tpu.memory_space<vmem>>, %arg11: memref<1x32xf32, #tpu.memory_space<vmem>>, %arg12: memref<1x128x32xf32, #tpu.memory_space<vmem>>) attributes {dimension_semantics = [#tpu.dimension_semantics<arbitrary>, #tpu.dimension_semantics<arbitrary>], iteration_bounds = array<i64: 2, 1>, scalar_prefetch = 1 : i64, scratch_operands = 3 : i64, tpu.core_type = #tpu.core_type<tc>, window_params = [{transform_indices = @transform_0, window_bounds = array<i64: 128, 16>}, {transform_indices = @transform_1, window_bounds = array<i64: 128, 16>}, {pipeline_mode = #tpu.pipeline_mode<synchronous>, transform_indices = @transform_2, window_bounds = array<i64: 32, 32>}, {pipeline_mode = #tpu.pipeline_mode<synchronous>, transform_indices = @transform_3, window_bounds = array<i64: 1, 32>}, {pipeline_mode = #tpu.pipeline_mode<synchronous>, transform_indices = @transform_4, window_bounds = array<i64: 1, 32>}, {transform_indices = @transform_5, window_bounds = array<i64: 1>}, {transform_indices = @transform_6, window_bounds = array<i64: 1, 128>}]} {
    %c0_i32 = arith.constant 0 : i32
    %0 = arith.cmpi eq, %arg0, %c0_i32 : i32
    %1 = arith.extui %0 : i1 to i32
    %c0_i32_0 = arith.constant 0 : i32
    %2 = arith.cmpi ne, %1, %c0_i32_0 : i32
    scf.if %2 {
      %c0_i32_2 = arith.constant 0 : i32
      %6 = arith.cmpi eq, %arg1, %c0_i32_2 : i32
      %7 = arith.extui %6 : i1 to i32
      %c0_i32_3 = arith.constant 0 : i32
      %8 = arith.cmpi ne, %7, %c0_i32_3 : i32
      scf.if %8 {
        %cst_27 = arith.constant 0.000000e+00 : f32
        %46 = vector.broadcast %cst_27 : f32 to vector<1x32xf32>
        %c0_28 = arith.constant 0 : index
        %c0_29 = arith.constant 0 : index
        %47 = vector.load %arg10[%c0_28, %c0_29] : memref<1x32xf32, #tpu.memory_space<vmem>>, vector<1x32xf32>
        tpu.vector_store %arg10[%c0_28, %c0_29], %46 {strides = array<i32>} : memref<1x32xf32, #tpu.memory_space<vmem>>, vector<1x32xf32>,
        %cst_30 = arith.constant 0.000000e+00 : f32
        %48 = vector.broadcast %cst_30 : f32 to vector<1x32xf32>
        %c0_31 = arith.constant 0 : index
        %c0_32 = arith.constant 0 : index
        %49 = vector.load %arg11[%c0_31, %c0_32] : memref<1x32xf32, #tpu.memory_space<vmem>>, vector<1x32xf32>
        tpu.vector_store %arg11[%c0_31, %c0_32], %48 {strides = array<i32>} : memref<1x32xf32, #tpu.memory_space<vmem>>, vector<1x32xf32>,
      } else {
      }
      %c0 = arith.constant 0 : index
      %c0_4 = arith.constant 0 : index
      %9 = vector.load %arg3[%c0, %c0_4] : memref<128x16xbf16, #tpu.memory_space<vmem>>, vector<128x16xbf16>
      %c0_5 = arith.constant 0 : index
      %c0_6 = arith.constant 0 : index
      %10 = vector.load %arg4[%c0_5, %c0_6] : memref<128x16xbf16, #tpu.memory_space<vmem>>, vector<128x16xbf16>
      %11 = tpu.concatenate %9, %10 in 1 : vector<128x16xbf16>, vector<128x16xbf16> -> vector<128x32xbf16>
      %c0_7 = arith.constant 0 : index
      %c0_8 = arith.constant 0 : index
      %12 = vector.load %arg5[%c0_7, %c0_8] : memref<32x32xbf16, #tpu.memory_space<vmem>>, vector<32x32xbf16>
      %cst = arith.constant dense<0.000000e+00> : vector<128x32xf32>
      %13 = tpu.matmul %11, %12, %cst {dimension_numbers = #tpu.dot_dimension_numbers<[1], [0], [0], [1], [0, 0, 1, 1], [], []>} : vector<128x32xbf16>, vector<32x32xbf16>, vector<128x32xf32> -> vector<128x32xf32>
      %c0_9 = arith.constant 0 : index
      %c0_10 = arith.constant 0 : index
      %14 = vector.load %arg6[%c0_9, %c0_10] : memref<1x32xf32, #tpu.memory_space<vmem>>, vector<1x32xf32>
      %15 = vector.broadcast %14 : vector<1x32xf32> to vector<128x32xf32>
      %16 = arith.addf %13, %15 : vector<128x32xf32>
      %cst_11 = arith.constant 0.000000e+00 : f32
      %17 = vector.broadcast %cst_11 : f32 to vector<128x32xf32>
      %18 = arith.cmpf ogt, %16, %17 : vector<128x32xf32>
      %cst_12 = arith.constant 0.00999999977 : f32
      %19 = vector.broadcast %cst_12 : f32 to vector<128x32xf32>
      %20 = arith.mulf %19, %16 : vector<128x32xf32>
      %21 = arith.select %18, %16, %20 : vector<128x32xi1>, vector<128x32xf32>
      %22 = arith.index_cast %arg1 : i32 to index
      %c0_13 = arith.constant 0 : index
      %c0_14 = arith.constant 0 : index
      %23 = vector.load %arg12[%22, %c0_13, %c0_14] : memref<1x128x32xf32, #tpu.memory_space<vmem>>, vector<1x128x32xf32>
      %24 = vector.shape_cast %23 : vector<1x128x32xf32> to vector<128x32xf32>
      %25 = vector.shape_cast %21 : vector<128x32xf32> to vector<1x128x32xf32>
      tpu.vector_store %arg12[%22, %c0_13, %c0_14], %25 {strides = array<i32>} : memref<1x128x32xf32, #tpu.memory_space<vmem>>, vector<1x128x32xf32>,
      %c128_i32 = arith.constant 128 : i32
      %26 = arith.muli %arg1, %c128_i32 : i32
      %27 = tpu.iota {dimensions = array<i32: 0>} : vector<128x32xi32>
      %28 = vector.broadcast %26 : i32 to vector<128x32xi32>
      %29 = arith.addi %28, %27 : vector<128x32xi32>
      %c0_15 = arith.constant 0 : index
      %30 = memref.load %arg2[%c0_15] : memref<1xi32, #tpu.memory_space<smem>>
      %31 = vector.broadcast %30 : i32 to vector<128x32xi32>
      %32 = arith.cmpi slt, %29, %31 : vector<128x32xi32>
      %cst_16 = arith.constant 0.000000e+00 : f32
      %33 = vector.broadcast %cst_16 : f32 to vector<128x32xf32>
      %34 = arith.select %32, %21, %33 : vector<128x32xi1>, vector<128x32xf32>
      %c0_17 = arith.constant 0 : index
      %c0_18 = arith.constant 0 : index
      %35 = vector.load %arg10[%c0_17, %c0_18] : memref<1x32xf32, #tpu.memory_space<vmem>>, vector<1x32xf32>
      %cst_19 = arith.constant dense<0.000000e+00> : vector<32xf32>
      %36 = vector.multi_reduction <add>, %34, %cst_19 [0] : vector<128x32xf32> to vector<32xf32>
      %37 = vector.shape_cast %36 : vector<32xf32> to vector<1x32xf32>
      %38 = arith.addf %35, %37 : vector<1x32xf32>
      %c0_20 = arith.constant 0 : index
      %c0_21 = arith.constant 0 : index
      %39 = vector.load %arg10[%c0_20, %c0_21] : memref<1x32xf32, #tpu.memory_space<vmem>>, vector<1x32xf32>
      tpu.vector_store %arg10[%c0_20, %c0_21], %38 {strides = array<i32>} : memref<1x32xf32, #tpu.memory_space<vmem>>, vector<1x32xf32>,
      %c0_22 = arith.constant 0 : index
      %c0_23 = arith.constant 0 : index
      %40 = vector.load %arg11[%c0_22, %c0_23] : memref<1x32xf32, #tpu.memory_space<vmem>>, vector<1x32xf32>
      %41 = arith.mulf %34, %34 : vector<128x32xf32>
      %cst_24 = arith.constant dense<0.000000e+00> : vector<32xf32>
      %42 = vector.multi_reduction <add>, %41, %cst_24 [0] : vector<128x32xf32> to vector<32xf32>
      %43 = vector.shape_cast %42 : vector<32xf32> to vector<1x32xf32>
      %44 = arith.addf %40, %43 : vector<1x32xf32>
      %c0_25 = arith.constant 0 : index
      %c0_26 = arith.constant 0 : index
      %45 = vector.load %arg11[%c0_25, %c0_26] : memref<1x32xf32, #tpu.memory_space<vmem>>, vector<1x32xf32>
      tpu.vector_store %arg11[%c0_25, %c0_26], %44 {strides = array<i32>} : memref<1x32xf32, #tpu.memory_space<vmem>>, vector<1x32xf32>,
    } else {
    }
    %c1_i32 = arith.constant 1 : i32
    %3 = arith.cmpi eq, %arg0, %c1_i32 : i32
    %4 = arith.extui %3 : i1 to i32
    %c0_i32_1 = arith.constant 0 : i32
    %5 = arith.cmpi ne, %4, %c0_i32_1 : i32
    scf.if %5 {
      %6 = arith.index_cast %arg1 : i32 to index
      %c0 = arith.constant 0 : index
      %c0_2 = arith.constant 0 : index
      %7 = vector.load %arg12[%6, %c0, %c0_2] : memref<1x128x32xf32, #tpu.memory_space<vmem>>, vector<1x128x32xf32>
      %8 = vector.shape_cast %7 : vector<1x128x32xf32> to vector<128x32xf32>
      %c0_3 = arith.constant 0 : index
      %9 = memref.load %arg2[%c0_3] : memref<1xi32, #tpu.memory_space<smem>>
      %10 = arith.sitofp %9 : i32 to f32
      %c0_4 = arith.constant 0 : index
      %c0_5 = arith.constant 0 : index
      %11 = vector.load %arg10[%c0_4, %c0_5] : memref<1x32xf32, #tpu.memory_space<vmem>>, vector<1x32xf32>
      %12 = vector.broadcast %10 : f32 to vector<1x32xf32>
      %13 = arith.divf %11, %12 : vector<1x32xf32>
      %c0_6 = arith.constant 0 : index
      %c0_7 = arith.constant 0 : index
      %14 = vector.load %arg11[%c0_6, %c0_7] : memref<1x32xf32, #tpu.memory_space<vmem>>, vector<1x32xf32>
      %15 = vector.broadcast %10 : f32 to vector<1x32xf32>
      %16 = arith.divf %14, %15 : vector<1x32xf32>
      %17 = arith.mulf %13, %13 : vector<1x32xf32>
      %18 = arith.subf %16, %17 : vector<1x32xf32>
      %cst = arith.constant 0.000000e+00 : f32
      %19 = vector.broadcast %cst : f32 to vector<1x32xf32>
      %20 = arith.maximumf %18, %19 : vector<1x32xf32>
      %c0_8 = arith.constant 0 : index
      %c0_9 = arith.constant 0 : index
      %21 = vector.load %arg7[%c0_8, %c0_9] : memref<1x32xf32, #tpu.memory_space<vmem>>, vector<1x32xf32>
      %cst_10 = arith.constant 9.99999974E-6 : f32
      %22 = vector.broadcast %cst_10 : f32 to vector<1x32xf32>
      %23 = arith.addf %20, %22 : vector<1x32xf32>
      %24 = math.rsqrt %23 : vector<1x32xf32>
      %25 = arith.mulf %21, %24 : vector<1x32xf32>
      %c0_11 = arith.constant 0 : index
      %26 = memref.load %arg8[%c0_11] : memref<1xf32, #tpu.memory_space<smem>>
      %27 = arith.mulf %13, %25 : vector<1x32xf32>
      %cst_12 = arith.constant dense<0.000000e+00> : vector<1xf32>
      %28 = vector.multi_reduction <add>, %27, %cst_12 [1] : vector<1x32xf32> to vector<1xf32>
      %29 = vector.shape_cast %28 : vector<1xf32> to vector<1x1xf32>
      %30 = vector.broadcast %26 : f32 to vector<1x1xf32>
      %31 = arith.subf %30, %29 : vector<1x1xf32>
      %cst_13 = arith.constant dense<0.000000e+00> : vector<1x128xf32>
      %32 = tpu.matmul %25, %8, %cst_13 {dimension_numbers = #tpu.dot_dimension_numbers<[1], [1], [0], [0], [0, 0, 1, 0], [], []>} : vector<1x32xf32>, vector<128x32xf32>, vector<1x128xf32> -> vector<1x128xf32>
      %33 = vector.broadcast %31 : vector<1x1xf32> to vector<1x128xf32>
      %34 = arith.addf %32, %33 : vector<1x128xf32>
      %cst_14 = arith.constant 0.000000e+00 : f32
      %35 = vector.broadcast %cst_14 : f32 to vector<1x128xf32>
      %36 = arith.subf %35, %34 : vector<1x128xf32>
      %37 = math.exp %36 : vector<1x128xf32>
      %cst_15 = arith.constant 1.000000e+00 : f32
      %38 = vector.broadcast %cst_15 : f32 to vector<1x128xf32>
      %39 = arith.addf %38, %37 : vector<1x128xf32>
      %cst_16 = arith.constant 1.000000e+00 : f32
      %40 = vector.broadcast %cst_16 : f32 to vector<1x128xf32>
      %41 = arith.divf %40, %39 : vector<1x128xf32>
      %c0_17 = arith.constant 0 : index
      %c0_18 = arith.constant 0 : index
      %42 = vector.load %arg9[%c0_17, %c0_18] : memref<1x128xf32, #tpu.memory_space<vmem>>, vector<1x128xf32>
      tpu.vector_store %arg9[%c0_17, %c0_18], %41 {strides = array<i32>} : memref<1x128xf32, #tpu.memory_space<vmem>>, vector<1x128xf32>,
    } else {
    }
    return
  }
  func.func @transform_0(%arg0: i32, %arg1: i32, %arg2: memref<1xi32, #tpu.memory_space<smem>>) -> (i32, i32) {
    %c1_i32 = arith.constant 1 : i32
    %0 = arith.subi %c1_i32, %arg0 : i32
    %1 = arith.muli %0, %arg1 : i32
    %c0_i32 = arith.constant 0 : i32
    %c0_i32_0 = arith.constant 0 : i32
    return %1, %c0_i32 : i32, i32
  }
  func.func @transform_1(%arg0: i32, %arg1: i32, %arg2: memref<1xi32, #tpu.memory_space<smem>>) -> (i32, i32) {
    %c1_i32 = arith.constant 1 : i32
    %0 = arith.subi %c1_i32, %arg0 : i32
    %1 = arith.muli %0, %arg1 : i32
    %c0_i32 = arith.constant 0 : i32
    %c0_i32_0 = arith.constant 0 : i32
    return %1, %c0_i32 : i32, i32
  }
  func.func @transform_2(%arg0: i32, %arg1: i32, %arg2: memref<1xi32, #tpu.memory_space<smem>>) -> (i32, i32) {
    %c0_i32 = arith.constant 0 : i32
    %c0_i32_0 = arith.constant 0 : i32
    %c0_i32_1 = arith.constant 0 : i32
    return %c0_i32, %c0_i32_0 : i32, i32
  }
  func.func @transform_3(%arg0: i32, %arg1: i32, %arg2: memref<1xi32, #tpu.memory_space<smem>>) -> (i32, i32) {
    %c0_i32 = arith.constant 0 : i32
    %c0_i32_0 = arith.constant 0 : i32
    %c0_i32_1 = arith.constant 0 : i32
    return %c0_i32, %c0_i32_0 : i32, i32
  }
  func.func @transform_4(%arg0: i32, %arg1: i32, %arg2: memref<1xi32, #tpu.memory_space<smem>>) -> (i32, i32) {
    %c0_i32 = arith.constant 0 : i32
    %c0_i32_0 = arith.constant 0 : i32
    %c0_i32_1 = arith.constant 0 : i32
    return %c0_i32, %c0_i32_0 : i32, i32
  }
  func.func @transform_5(%arg0: i32, %arg1: i32, %arg2: memref<1xi32, #tpu.memory_space<smem>>) -> i32 {
    %c0_i32 = arith.constant 0 : i32
    %c0_i32_0 = arith.constant 0 : i32
    return %c0_i32 : i32
  }
  func.func @transform_6(%arg0: i32, %arg1: i32, %arg2: memref<1xi32, #tpu.memory_space<smem>>) -> (i32, i32) {
    %0 = arith.muli %arg0, %arg1 : i32
    %c0_i32 = arith.constant 0 : i32
    %c0_i32_0 = arith.constant 0 : i32
    return %c0_i32, %0 : i32, i32
  }
}

</mosaic_0001>

<bundles_post_ra>
// kernel: tpu_custom_call.1
= control target key start
LH: loop header
LB: loop body
LE: loop exit
PB: predicated region body
PF: predicated region fallthrough
CT: control target
= control target key end

     0   :  { %s1828_s0 = inlined_call_operand.<no memory space> [shape: s32[1], index: 0, kind: input, shape index: {}]   ;;  %s1829_s1 = inlined_call_operand.vmem [shape: bf16[128,16], index: 1, kind: input, shape index: {}]   ;;  %s1830_s2 = inlined_call_operand.vmem [shape: bf16[128,16], index: 2, kind: input, shape index: {}]   ;;  %s1831_s3 = inlined_call_operand.vmem [shape: bf16[32,32], index: 3, kind: input, shape index: {}]   ;;  %s1832_s4 = inlined_call_operand.vmem [shape: f32[1,32], index: 4, kind: input, shape index: {}]   ;;  %s1833_s5 = inlined_call_operand.vmem [shape: f32[1,32], index: 5, kind: input, shape index: {}]   ;;  %s1834_s6 = inlined_call_operand.<no memory space> [shape: f32[1], index: 6, kind: input, shape index: {}]   ;;  %s1835_s7 = inlined_call_operand.hbm [shape: f32[1,128], index: 7, kind: output, shape index: {}]  }
   0x1   :  { %12 = sst [smem:[#allocation6]] %s1828_s0 }
   0x2   :  { %13 = sst [smem:[#allocation7]] %s1834_s6 }
   0x3   :  { %14 = vsyncpa [#allocation9], 0 }
   0x4   :  { %16 = vsyncpa [#allocation9 + $0x1], 0  ;;  %s1467_s28 = smov 0   ;;  %s1469_s29 = smov 0  }
   0x5   :  { %s1471_s30 = smov 0  }
   0x6 LB: > { %s1119_s0 = sadd.s32 4294967295, %s1413_s30   ;;  %s1120_s6 = sadd.s32 4294967294, %s1413_s30   ;;  %s1413_s30 = sphi %s1471_s30, %s22_s30   ;;  %s1409_s29 = sphi %s1469_s29, %s1840_s29   ;;  %s1405_s28 = sphi %s1467_s28, %s1839_s28  }
   0x7   : > { %s34_s8 = sadd.s32 1, %s1409_s29  ;;  %p1125_p0 = scmp.ge.s32.totalorder %s1413_s30, 1 }
   0x8   : > { %p36_p1 = scmp.ge.s32.totalorder %s34_s8, 2  ;;  %p260_p2 = scmp.lt.s32.totalorder %s1413_s30, 3 }
   0xa   : > { %s1842_s8 = smov (%p36_p1, %s34_s8), 0  ;;  %p261_p3 = pnand %p1125_p0, %p260_p2 }
   0xb   : > { %p1126_p4 = scmp.ne.s32.totalorder (!%p261_p3), %s1405_s28, 0 }
   0xc   : > { %264 = sbr.rel (%p261_p3) target bundleno = 750 (0x2ee), region = 44 }
  0x13   : > { %323 = sbr.rel (%p1126_p4) target bundleno = 417 (0x1a1), region = 48  ;;  %v1335_v0 = vld [vmem:[%s1830_s2] sm:$0xff] (!%p1126_p4)   ;;  %v1336_v1 = vld [vmem:[%s1830_s2 + $0x8] sm:$0xff] (!%p1126_p4)   ;;  %s1415_s13 = smov (!%p1126_p4), 16   ;;  %v1337_v2 = vld [vmem:[%s1830_s2 + $0x10] sm:$0xff] (!%p1126_p4)   ;;  %vm459_vm0 = vcmask (!%p1126_p4), 130048   ;;  %v687_v35 = vlaneseq (!%p1126_p4) }
  0x14   : > { %443 = vrot.lane.b32.xlu0 (!%p1126_p4), %v1335_v0, %s1415_s13  ;;  %447 = vrot.lane.b32.xlu1 (!%p1126_p4), %v1337_v2, %s1415_s13  ;;  %v1338_v3 = vld [vmem:[%s1830_s2 + $0x18] sm:$0xff] (!%p1126_p4)   ;;  %v1339_v4 = vld [vmem:[%s1830_s2 + $0x20] sm:$0xff] (!%p1126_p4)   ;;  %vm507_vm1 = vcmask (!%p1126_p4), 261120   ;;  %vm328_vm2 = vcmask (!%p1126_p4), 253952   ;;  %v1416_v34 = vmov (!%p1126_p4), 0.0   ;;  %s721_s27 = sld [smem:[#allocation6]] (!%p1126_p4) }
  0x15   : > { %v1340_v5 = vld [vmem:[%s1830_s2 + $0x28] sm:$0xff] (!%p1126_p4)   ;;  %v1343_v6 = vld [vmem:[%s1831_s3] sm:$0xff] (!%p1126_p4)   ;;  %v1341_v8 = vld [vmem:[%s1830_s2 + $0x30] sm:$0xff] (!%p1126_p4)   ;;  %329 = vst.msk [vmem:[#allocation2] sm:$0x1] (!%p1126_p4), %vm328_vm2, %v1416_v34  ;;  %v1562_v36 = vshrl.u32 (!%p1126_p4), %v687_v35, 7 }
  0x16   : > { %v1344_v7 = vld [vmem:[%s1831_s3 + $0x8] sm:$0xff] (!%p1126_p4)   ;;  %1203 = vmatprep.subr.bf16.mxu0 (!%p1126_p4), %v1343_v6  ;;  %1290 = vmatprep.subr.bf16.mxu1 (!%p1126_p4), %v1343_v6  ;;  %v1342_v9 = vld [vmem:[%s1830_s2 + $0x38] sm:$0xff] (!%p1126_p4)   ;;  %v1345_v10 = vld [vmem:[%s1829_s1] sm:$0xff] (!%p1126_p4)   ;;  %330 = vst.msk [vmem:[#allocation3] sm:$0x1] (!%p1126_p4), %vm328_vm2, %v1416_v34 }
  0x17   : > { %1204 = vmatpush3.bf16.msra.mxu0 (!%p1126_p4), %v1343_v6  ;;  %1292 = vmatpush3.bf16.msra.mxu1 (!%p1126_p4), %v1343_v6  ;;  %v1347_v12 = vld [vmem:[%s1829_s1 + $0x10] sm:$0xff] (!%p1126_p4)   ;;  %v1346_v14 = vld [vmem:[%s1829_s1 + $0x8] sm:$0xff] (!%p1126_p4)   ;;  %v1350_v19 = vld [vmem:[%s1829_s1 + $0x20] sm:$0xff] (!%p1126_p4)   ;;  %v690_v37 = vadd.s32 (!%p1126_p4), 16, %v1562_v36  ;;  %v691_v39 = vadd.s32 (!%p1126_p4), 24, %v1562_v36  ;;  %v689_v41 = vadd.s32 (!%p1126_p4), 8, %v1562_v36 }
  0x18   : > { %445 = vrot.lane.b32.xlu0 (!%p1126_p4), %v1336_v1, %s1415_s13  ;;  %449 = vrot.lane.b32.xlu1 (!%p1126_p4), %v1338_v3, %s1415_s13  ;;  %v1348_v21 = vld [vmem:[%s1829_s1 + $0x18] sm:$0xff] (!%p1126_p4)   ;;  %v1349_v22 = vld [vmem:[%s1829_s1 + $0x28] sm:$0xff] (!%p1126_p4)   ;;  %v1576_v43 = vadd.s32 (!%p1126_p4), 48, %v1562_v36  ;;  %v1583_v46 = vadd.s32 (!%p1126_p4), 32, %v1562_v36  ;;  %v1588_v49 = vadd.s32 (!%p1126_p4), 56, %v1562_v36  ;;  %v1591_v50 = vadd.s32 (!%p1126_p4), 40, %v1562_v36 }
  0x19   : > { %1205 = vmatprep.subr.bf16.mxu0 (!%p1126_p4), %v1344_v7  ;;  %1291 = vmatprep.subr.bf16.mxu1 (!%p1126_p4), %v1344_v7  ;;  %v1351_v25 = vld [vmem:[%s1829_s1 + $0x30] sm:$0xff] (!%p1126_p4)   ;;  %v1352_v31 = vld [vmem:[%s1829_s1 + $0x38] sm:$0xff] (!%p1126_p4)   ;;  %v1571_v40 = vld [vmem:[%s1832_s4] ss:$0 sm:$0xff] (!%p1126_p4)  ;;  %v1595_v54 = vadd.s32 (!%p1126_p4), 80, %v1562_v36  ;;  %v1601_v57 = vadd.s32 (!%p1126_p4), 64, %v1562_v36 }
  0x1a   : > { %v1565_v38 = vstv %s721_s27  ;;  %v1606_v60 = vadd.s32 88, %v1562_v36 }
  0x1b   : > { %1206 = vmatpush3.bf16.msra.mxu0 %v1344_v7  ;;  %1293 = vmatpush3.bf16.msra.mxu1 %v1344_v7  ;;  %vm725_vm3 = vcmp.lt.s32.totalorder %v690_v37, %v1565_v38  ;;  %vm723_vm4 = vcmp.lt.s32.totalorder %v1562_v36, %v1565_v38  ;;  %vm726_vm5 = vcmp.lt.s32.totalorder %v691_v39, %v1565_v38 }
  0x1c   : > { %451 = vrot.lane.b32.xlu0 %v1339_v4, %s1415_s13  ;;  %453 = vrot.lane.b32.xlu1 %v1340_v5, %s1415_s13  ;;  %vm724_vm6 = vcmp.lt.s32.totalorder %v689_v41, %v1565_v38  ;;  %vm729_vm9 = vcmp.lt.s32.totalorder %v1576_v43, %v1565_v38  ;;  %vm727_vm11 = vcmp.lt.s32.totalorder %v1583_v46, %v1565_v38  ;;  %v1620_v5 = vadd.s32 72, %v1562_v36 }
  0x1d   : > { %vm730_vm13 = vcmp.lt.s32.totalorder %v1588_v49, %v1565_v38  ;;  %vm728_vm14 = vcmp.lt.s32.totalorder %v1591_v50, %v1565_v38 }
  0x20   : > { %455 = vrot.lane.b32.xlu0 %v1341_v8, %s1415_s13  ;;  %457 = vrot.lane.b32.xlu1 %v1342_v9, %s1415_s13 }
  0x86   : > { %v444_v11 = vpop.permute.xlu0 %443  ;;  %v448_v15 = vpop.permute.xlu1 %447 }
  0x87   : > { %v462_v13 = vsel %vm459_vm0, %v1345_v10, %v444_v11  ;;  %v468_v17 = vsel %vm459_vm0, %v1347_v12, %v448_v15  ;;  %v1628_v11 = vadd.s32 112, %v1562_v36 }
  0x88   : > { %1207 = vmatprep.mubr.msk.bf16.mxu0 %vm507_vm1, %v462_v13 }
  0x8a   : > { %v446_v16 = vpop.permute.xlu0 %445  ;;  %v450_v20 = vpop.permute.xlu1 %449 }
  0x8b   : > { %v465_v18 = vsel %vm459_vm0, %v1346_v14, %v446_v16  ;;  %v471_v27 = vsel %vm459_vm0, %v1348_v21, %v450_v20 }
  0x8c   : > { %1208 = vmatmul.mubr.msk.bf16.vlgmr.msra.gmra.mrb[0].mxu0 %vm507_vm1, %v465_v18 }
  0x8d   : > { %1211 = vmatprep.mubr.msk.bf16.mxu0 %vm507_vm1, %v468_v17 }
  0x8e   : > { %v452_v23 = vpop.permute.xlu0 %451  ;;  %v454_v26 = vpop.permute.xlu1 %453 }
  0x8f   : > { %v474_v24 = vsel %vm459_vm0, %v1350_v19, %v452_v23  ;;  %v477_v28 = vsel %vm459_vm0, %v1349_v22, %v454_v26 }
  0x90   : > { %1215 = vmatprep.mubr.msk.bf16.mxu1 %vm507_vm1, %v474_v24 }
  0x91   : > { %1216 = vmatmul.mubr.msk.bf16.vlgmr.msra.gmra.mrb[0].mxu1 %vm507_vm1, %v477_v28 }
  0x92   : > { %v456_v29 = vpop.permute.xlu0 %455  ;;  %v458_v32 = vpop.permute.xlu1 %457 }
  0x93   : > { %v480_v30 = vsel %vm459_vm0, %v1351_v25, %v456_v29  ;;  %v483_v33 = vsel %vm459_vm0, %v1352_v31, %v458_v32 }
  0x94   : > { %1212 = vmatmul.mubr.msk.bf16.gmra.mrb[4].mxu0 %vm507_vm1, %v471_v27  ;;  %1219 = vmatprep.mubr.msk.bf16.mxu1 %vm507_vm1, %v480_v30 }
  0x99   : > { %1220 = vmatmul.mubr.msk.bf16.gmra.mrb[4].mxu1 %vm507_vm1, %v483_v33 }
 0x15f   : > { %v1209_v42 = vpop.f32.mrb[0].mxu0 }
 0x160   : > { %v567_v44 = vadd.f32 %v1209_v42, %v1571_v40  ;;  %v558_v45 = vpop.f32.mrb[1].mxu0 }
 0x161   : > { %v559_v47 = vadd.f32 %v1571_v40, %v558_v45  ;;  %v1210_v48 = vpop.f32.mrb[2].mxu0 }
 0x162   : > { %vm623_vm7 = vcmp.gt.f32.partialorder %v567_v44, 0.0  ;;  %v639_v51 = vmul.f32 0.01, %v567_v44  ;;  %v570_v52 = vadd.f32 %v1210_v48, %v1571_v40  ;;  %v561_v53 = vpop.f32.mrb[3].mxu0 }
 0x163   : > { %vm621_vm8 = vcmp.gt.f32.partialorder %v559_v47, 0.0  ;;  %v637_v55 = vmul.f32 0.01, %v559_v47  ;;  %v562_v56 = vadd.f32 %v1571_v40, %v561_v53  ;;  %v1666_v53 = vadd.s32 96, %v1562_v36 }
 0x164   : > { %v655_v58 = vsel %vm623_vm7, %v567_v44, %v639_v51  ;;  %vm624_vm10 = vcmp.gt.f32.partialorder %v570_v52, 0.0  ;;  %v640_v59 = vmul.f32 0.01, %v570_v52  ;;  %v1611_v0 = vpop.f32.mrb[0].mxu1 }
 0x165   : > { %673 = vst.msk [vmem:[#allocation4 + $0x10] sm:$0xff] %vm507_vm1, %v655_v58  ;;  %v741_v61 = vsel %vm725_vm3, %v655_v58, 0.0  ;;  %v653_v62 = vsel %vm621_vm8, %v559_v47, %v637_v55  ;;  %vm622_vm12 = vcmp.gt.f32.partialorder %v562_v56, 0.0  ;;  %v638_v63 = vmul.f32 0.01, %v562_v56  ;;  %v1617_v4 = vpop.f32.mrb[1].mxu1 }
 0x166   : > { %v799_v1 = vmul.f32 %v741_v61, %v741_v61  ;;  %671 = vst.msk [vmem:[#allocation4] sm:$0xff] %vm507_vm1, %v653_v62  ;;  %v739_v2 = vsel %vm723_vm4, %v653_v62, 0.0  ;;  %v656_v3 = vsel %vm624_vm10, %v570_v52, %v640_v59  ;;  %v1625_v10 = vpop.f32.mrb[2].mxu1  ;;  %v759_v12 = vsel %vm507_vm1, %v741_v61, 0.0 }
 0x167   : > { %v797_v6 = vmul.f32 %v739_v2, %v739_v2  ;;  %674 = vst.msk [vmem:[#allocation4 + $0x18] sm:$0xff] %vm507_vm1, %v656_v3  ;;  %v742_v7 = vsel %vm726_vm5, %v656_v3, 0.0  ;;  %v654_v8 = vsel %vm622_vm12, %v562_v56, %v638_v63  ;;  %v1213_v9 = vpop.f32.mrb[4].mxu0  ;;  %v756_v14 = vsel %vm507_vm1, %v739_v2, 0.0  ;;  %v593_v17 = vpop.f32.mrb[3].mxu1 }
 0x168   : > { %v816_v13 = vsel %vm507_vm1, %v799_v1, 0.0  ;;  %672 = vst.msk [vmem:[#allocation4 + $0x8] sm:$0xff] %vm507_vm1, %v654_v8  ;;  %v740_v15 = vsel %vm724_vm6, %v654_v8, 0.0  ;;  %v574_v16 = vpop.f32.mrb[5].mxu0  ;;  %v761_v18 = vsel %vm507_vm1, %v742_v7, 0.0  ;;  %v583_v21 = vadd.f32 %v1213_v9, %v1571_v40 }
 0x169   : > { %v757_v19 = vsel %vm507_vm1, %v740_v15, 0.0  ;;  %v798_v20 = vmul.f32 %v740_v15, %v740_v15  ;;  %v1214_v22 = vpop.f32.mrb[6].mxu0  ;;  %v800_v23 = vmul.f32 %v742_v7, %v742_v7  ;;  %v575_v25 = vadd.f32 %v1571_v40, %v574_v16 }
 0x16a   : > { %v758_v24 = vadd.f32 %v757_v19, %v756_v14  ;;  %v586_v26 = vadd.f32 %v1214_v22, %v1571_v40  ;;  %v577_v27 = vpop.f32.mrb[7].mxu0  ;;  %v813_v28 = vsel %vm507_vm1, %v797_v6, 0.0  ;;  %vm627_vm15 = vcmp.gt.f32.partialorder %v583_v21, 0.0 }
 0x16b   : > { %v814_v29 = vsel %vm507_vm1, %v798_v20, 0.0  ;;  %v643_v30 = vmul.f32 0.01, %v583_v21  ;;  %vm625_vm0 = vcmp.gt.f32.partialorder %v575_v25, 0.0  ;;  %v641_v33 = vmul.f32 0.01, %v575_v25 }
 0x16c   : > { %v760_v31 = vadd.f32 %v759_v12, %v758_v24  ;;  %v815_v32 = vadd.f32 %v814_v29, %v813_v28  ;;  %vm733_vm3 = vcmp.lt.s32.totalorder %v1595_v54, %v1565_v38  ;;  %vm628_vm4 = vcmp.gt.f32.partialorder %v586_v26, 0.0  ;;  %v1652_v39 = vpop.f32.mrb[4].mxu1 }
 0x16d   : > { %v659_v34 = vsel %vm627_vm15, %v583_v21, %v643_v30  ;;  %v644_v35 = vmul.f32 0.01, %v586_v26  ;;  %v578_v37 = vadd.f32 %v1571_v40, %v577_v27  ;;  %vm731_vm5 = vcmp.lt.s32.totalorder %v1601_v57, %v1565_v38  ;;  %v1658_v47 = vpop.f32.mrb[5].mxu1 }
 0x16e   : > { %v817_v41 = vadd.f32 %v816_v13, %v815_v32  ;;  %677 = vst.msk [vmem:[#allocation4 + $0x30] sm:$0xff] %vm507_vm1, %v659_v34  ;;  %v745_v42 = vsel %vm729_vm9, %v659_v34, 0.0  ;;  %v657_v44 = vsel %vm625_vm0, %v575_v25, %v641_v33  ;;  %v762_v45 = vadd.f32 %v761_v18, %v760_v31  ;;  %v1668_v55 = vpop.f32.mrb[6].mxu1 }
 0x16f   : > { %v818_v48 = vsel %vm507_vm1, %v800_v23, 0.0  ;;  %675 = vst.msk [vmem:[#allocation4 + $0x20] sm:$0xff] %vm507_vm1, %v657_v44  ;;  %v743_v51 = vsel %vm727_vm11, %v657_v44, 0.0  ;;  %v660_v52 = vsel %vm628_vm4, %v586_v26, %v644_v35  ;;  %vm734_vm6 = vcmp.lt.s32.totalorder %v1606_v60, %v1565_v38  ;;  %v1677_v46 = vpop.f32.mrb[7].mxu1 }
 0x170   : > { %v763_v43 = vsel %vm507_vm1, %v743_v51, 0.0  ;;  %v801_v56 = vmul.f32 %v743_v51, %v743_v51  ;;  %v819_v58 = vadd.f32 %v818_v48, %v817_v41  ;;  %678 = vst.msk [vmem:[#allocation4 + $0x38] sm:$0xff] %vm507_vm1, %v660_v52  ;;  %v1675_v59 = vadd.s32 120, %v1562_v36 }
 0x171   : > { %v767_v61 = vsel %vm507_vm1, %v745_v42, 0.0  ;;  %v803_v62 = vmul.f32 %v745_v42, %v745_v42  ;;  %v764_v63 = vadd.f32 %v763_v43, %v762_v45  ;;  %vm626_vm7 = vcmp.gt.f32.partialorder %v578_v37, 0.0 }
 0x172   : > { %v820_v1 = vsel %vm507_vm1, %v801_v56, 0.0  ;;  %v642_v2 = vmul.f32 0.01, %v578_v37  ;;  %v599_v3 = vadd.f32 %v1611_v0, %v1571_v40  ;;  %v591_v6 = vadd.f32 %v1571_v40, %v1617_v4 }
 0x173   : > { %vm732_vm8 = vcmp.lt.s32.totalorder %v1620_v5, %v1565_v38  ;;  %v821_v7 = vadd.f32 %v820_v1, %v819_v58  ;;  %v746_v8 = vsel %vm730_vm13, %v660_v52, 0.0  ;;  %v602_v9 = vadd.f32 %v1625_v10, %v1571_v40 }
 0x174   : > { %v594_v12 = vadd.f32 %v1571_v40, %v593_v17  ;;  %v658_v13 = vsel %vm626_vm7, %v578_v37, %v642_v2  ;;  %vm631_vm9 = vcmp.gt.f32.partialorder %v599_v3, 0.0  ;;  %v647_v14 = vmul.f32 0.01, %v599_v3 }
 0x175   : > { %vm629_vm10 = vcmp.gt.f32.partialorder %v591_v6, 0.0  ;;  %676 = vst.msk [vmem:[#allocation4 + $0x28] sm:$0xff] %vm507_vm1, %v658_v13  ;;  %v744_v0 = vsel %vm728_vm14, %v658_v13, 0.0  ;;  %v645_v4 = vmul.f32 0.01, %v591_v6  ;;  %vm632_vm11 = vcmp.gt.f32.partialorder %v602_v9, 0.0 }
 0x176   : > { %v648_v15 = vmul.f32 0.01, %v602_v9  ;;  %v804_v49 = vmul.f32 %v746_v8, %v746_v8  ;;  %v765_v16 = vsel %vm507_vm1, %v744_v0, 0.0  ;;  %v802_v18 = vmul.f32 %v744_v0, %v744_v0 }
 0x177   : > { %v663_v10 = vsel %vm631_vm9, %v599_v3, %v647_v14  ;;  %v766_v19 = vadd.f32 %v765_v16, %v764_v63  ;;  %v661_v20 = vsel %vm629_vm10, %v591_v6, %v645_v4  ;;  %v824_v50 = vsel %vm507_vm1, %v803_v62, 0.0 }
 0x178   : > { %681 = vst.msk [vmem:[#allocation4 + $0x50] sm:$0xff] %vm507_vm1, %v663_v10  ;;  %v749_v17 = vsel %vm733_vm3, %v663_v10, 0.0  ;;  %v664_v21 = vsel %vm632_vm11, %v602_v9, %v648_v15  ;;  %v769_v22 = vsel %vm507_vm1, %v746_v8, 0.0  ;;  %v822_v23 = vsel %vm507_vm1, %v802_v18, 0.0  ;;  %679 = vst.msk [vmem:[#allocation4 + $0x40] sm:$0xff] %vm507_vm1, %v661_v20 }
 0x179   : > { %v747_v24 = vsel %vm731_vm5, %v661_v20, 0.0  ;;  %682 = vst.msk [vmem:[#allocation4 + $0x58] sm:$0xff] %vm507_vm1, %v664_v21  ;;  %vm735_vm12 = vcmp.lt.s32.totalorder %v1666_v53, %v1565_v38  ;;  %v768_v54 = vadd.f32 %v767_v61, %v766_v19  ;;  %v823_v25 = vadd.f32 %v822_v23, %v821_v7 }
 0x17a   : > { %v805_v26 = vmul.f32 %v747_v24, %v747_v24  ;;  %vm630_vm13 = vcmp.gt.f32.partialorder %v594_v12, 0.0  ;;  %v826_v27 = vsel %vm507_vm1, %v804_v49, 0.0  ;;  %v807_v28 = vmul.f32 %v749_v17, %v749_v17 }
 0x17b   : > { %v646_v29 = vmul.f32 0.01, %v594_v12  ;;  %v615_v30 = vadd.f32 %v1652_v39, %v1571_v40  ;;  %v825_v31 = vadd.f32 %v824_v50, %v823_v25  ;;  %v770_v32 = vadd.f32 %v769_v22, %v768_v54 }
 0x17c   : > { %v771_v57 = vsel %vm507_vm1, %v747_v24, 0.0  ;;  %v750_v33 = vsel %vm734_vm6, %v664_v21, 0.0  ;;  %vm737_vm14 = vcmp.lt.s32.totalorder %v1628_v11, %v1565_v38  ;;  %v828_v34 = vsel %vm507_vm1, %v805_v26, 0.0 }
 0x17d   : > { %v662_v35 = vsel %vm630_vm13, %v594_v12, %v646_v29  ;;  %vm635_vm15 = vcmp.gt.f32.partialorder %v615_v30, 0.0  ;;  %v651_v37 = vmul.f32 0.01, %v615_v30  ;;  %v772_v41 = vadd.f32 %v771_v57, %v770_v32 }
 0x17e   : > { %v827_v42 = vadd.f32 %v826_v27, %v825_v31  ;;  %680 = vst.msk [vmem:[#allocation4 + $0x48] sm:$0xff] %vm507_vm1, %v662_v35  ;;  %v748_v39 = vsel %vm732_vm8, %v662_v35, 0.0  ;;  %v607_v60 = vadd.f32 %v1571_v40, %v1658_v47  ;;  %v808_v44 = vmul.f32 %v750_v33, %v750_v33  ;;  %v755_v35 = vld [vmem:[#allocation2] sm:$0x1] }
 0x17f   : > { %v773_v45 = vsel %vm507_vm1, %v748_v39, 0.0  ;;  %v806_v48 = vmul.f32 %v748_v39, %v748_v39  ;;  %v667_v51 = vsel %vm635_vm15, %v615_v30, %v651_v37  ;;  %v701_v56 = vadd.s32 104, %v1562_v36 }
 0x180   : > { %v829_v52 = vadd.f32 %v828_v34, %v827_v42  ;;  %v774_v43 = vadd.f32 %v773_v45, %v772_v41  ;;  %685 = vst.msk [vmem:[#allocation4 + $0x70] sm:$0xff] %vm507_vm1, %v667_v51  ;;  %vm633_vm0 = vcmp.gt.f32.partialorder %v607_v60, 0.0  ;;  %v775_v58 = vsel %vm507_vm1, %v749_v17, 0.0  ;;  %v796_v42 = vld [vmem:[#allocation3] sm:$0x1] }
 0x181   : > { %v830_v5 = vsel %vm507_vm1, %v806_v48, 0.0  ;;  %v649_v61 = vmul.f32 0.01, %v607_v60  ;;  %vm738_vm3 = vcmp.lt.s32.totalorder %v1675_v59, %v1565_v38  ;;  %v618_v63 = vadd.f32 %v1668_v55, %v1571_v40 }
 0x182   : > { %v776_v47 = vadd.f32 %v775_v58, %v774_v43  ;;  %v831_v62 = vadd.f32 %v830_v5, %v829_v52  ;;  %v610_v1 = vadd.f32 %v1571_v40, %v1677_v46  ;;  %v832_v2 = vsel %vm507_vm1, %v807_v28, 0.0 }
 0x183   : > { %v777_v36 = vsel %vm507_vm1, %v750_v33, 0.0  ;;  %v834_v3 = vsel %vm507_vm1, %v808_v44, 0.0  ;;  %v665_v6 = vsel %vm633_vm0, %v607_v60, %v649_v61  ;;  %vm636_vm4 = vcmp.gt.f32.partialorder %v618_v63, 0.0 }
 0x184   : > { %v833_v7 = vadd.f32 %v832_v2, %v831_v62  ;;  %683 = vst.msk [vmem:[#allocation4 + $0x60] sm:$0xff] %vm507_vm1, %v665_v6  ;;  %v751_v8 = vsel %vm735_vm12, %v665_v6, 0.0  ;;  %v778_v9 = vadd.f32 %v777_v36, %v776_v47  ;;  %v652_v40 = vmul.f32 0.01, %v618_v63 }
 0x185   : > { %v779_v55 = vsel %vm507_vm1, %v751_v8, 0.0  ;;  %v809_v12 = vmul.f32 %v751_v8, %v751_v8  ;;  %vm634_vm5 = vcmp.gt.f32.partialorder %v610_v1, 0.0  ;;  %v650_v14 = vmul.f32 0.01, %v610_v1 }
 0x186   : > { %v780_v46 = vadd.f32 %v779_v55, %v778_v9  ;;  %v835_v13 = vadd.f32 %v834_v3, %v833_v7  ;;  %vm736_vm6 = vcmp.lt.s32.totalorder %v701_v56, %v1565_v38  ;;  %v753_v0 = vsel %vm737_vm14, %v667_v51, 0.0 }
 0x187   : > { %v836_v4 = vsel %vm507_vm1, %v809_v12, 0.0  ;;  %v668_v53 = vsel %vm636_vm4, %v618_v63, %v652_v40  ;;  %v666_v49 = vsel %vm634_vm5, %v610_v1, %v650_v14  ;;  %v811_v10 = vmul.f32 %v753_v0, %v753_v0 }
 0x188   : > { %v837_v15 = vadd.f32 %v836_v4, %v835_v13  ;;  %686 = vst.msk [vmem:[#allocation4 + $0x78] sm:$0xff] %vm507_vm1, %v668_v53  ;;  %v754_v16 = vsel %vm738_vm3, %v668_v53, 0.0  ;;  %684 = vst.msk [vmem:[#allocation4 + $0x68] sm:$0xff] %vm507_vm1, %v666_v49  ;;  %v752_v18 = vsel %vm736_vm6, %v666_v49, 0.0  ;;  %v783_v20 = vsel %vm507_vm1, %v753_v0, 0.0 }
 0x189   : > { %v781_v19 = vsel %vm507_vm1, %v752_v18, 0.0  ;;  %v810_v17 = vmul.f32 %v752_v18, %v752_v18  ;;  %v812_v21 = vmul.f32 %v754_v16, %v754_v16  ;;  %v840_v24 = vsel %vm507_vm1, %v811_v10, 0.0 }
 0x18a   : > { %v782_v11 = vadd.f32 %v781_v19, %v780_v46  ;;  %v785_v38 = vsel %vm507_vm1, %v754_v16, 0.0 }
 0x18b   : > { %v838_v50 = vsel %vm507_vm1, %v810_v17, 0.0  ;;  %v842_v25 = vsel %vm507_vm1, %v812_v21, 0.0 }
 0x18c   : > { %v784_v22 = vadd.f32 %v783_v20, %v782_v11  ;;  %v839_v23 = vadd.f32 %v838_v50, %v837_v15 }
 0x18e   : > { %v786_v59 = vadd.f32 %v785_v38, %v784_v22  ;;  %v841_v54 = vadd.f32 %v840_v24, %v839_v23 }
 0x190   : > { %v787_v26 = vrot.slane %v786_v59, 4  ;;  %v843_v27 = vadd.f32 %v842_v25, %v841_v54 }
 0x192   : > { %v788_v28 = vadd.f32 %v787_v26, %v786_v59  ;;  %v844_v29 = vrot.slane %v843_v27, 4 }
 0x194   : > { %v789_v30 = vrot.slane %v788_v28, 2  ;;  %v845_v31 = vadd.f32 %v844_v29, %v843_v27 }
 0x196   : > { %v790_v32 = vadd.f32 %v789_v30, %v788_v28  ;;  %v846_v57 = vrot.slane %v845_v31, 2 }
 0x198   : > { %v791_v33 = vrot.slane %v790_v32, 1  ;;  %v847_v34 = vadd.f32 %v846_v57, %v845_v31 }
 0x19a   : > { %v792_v37 = vadd.f32 %v791_v33, %v790_v32  ;;  %v848_v41 = vrot.slane %v847_v34, 1 }
 0x19c   : > { %v793_v39 = vadd.f32 %v792_v37, %v755_v35  ;;  %v849_v60 = vadd.f32 %v848_v41, %v847_v34 }
 0x19e   : > { %795 = vst.msk [vmem:[#allocation2] sm:$0x1] %vm328_vm2, %v793_v39  ;;  %v850_v44 = vadd.f32 %v849_v60, %v796_v42 }
 0x1a0   : > { %851 = vst.msk [vmem:[#allocation3] sm:$0x1] %vm328_vm2, %v850_v44 }
 0x1a1 PF: > { %p1154_p5 = scmp.ne.s32.totalorder %s1405_s28, 1 }
 0x1a2   : > { %v858_v45 = vld [vmem:[#allocation4] sm:$0xff] (!%p1154_p5)  ;;  %v859_v48 = vld [vmem:[#allocation4 + $0x8] sm:$0xff] (!%p1154_p5)  ;;  %vm897_vm1 = vcmask (!%p1154_p5), 261120   ;;  %v1417_v51 = vmov (!%p1154_p5), 0.0|0.0   ;;  %s874_s11 = sld [smem:[#allocation6]] (!%p1154_p5)  ;;  %vm1418_vm8 = vmmov (!%p1154_p5), 0  }
 0x1a3   : > { %855 = sbr.rel (%p1154_p5) target bundleno = 727 (0x2d7), region = 56  ;;  %1258 = vmatprep.subr.bf16.mxu0 (!%p1154_p5), %v1417_v51  ;;  %v1259_v52 = vpack.c.bf16 (!%p1154_p5), %v859_v48, %v858_v45  ;;  %vm1768_vm7 = vmpackc.low (!%p1154_p5), %vm897_vm1, %vm897_vm1  ;;  %v1419_v56 = vmov (!%p1154_p5), 0.0   ;;  %v860_v58 = vld [vmem:[#allocation4 + $0x10] sm:$0xff] (!%p1154_p5)  ;;  %v861_v5 = vld [vmem:[#allocation4 + $0x18] sm:$0xff] (!%p1154_p5)  ;;  %vm891_vm2 = vcmask (!%p1154_p5), 253952   ;;  %s889_s15 = sld [smem:[#allocation7]] (!%p1154_p5) }
 0x1a4   : > { %1255 = vmatprep.mubr.msk.f32.mxu0 (!%p1154_p5), %vm1418_vm8, %v1419_v56  ;;  %v1263_v61 = vpack.c.bf16 (!%p1154_p5), %v861_v5, %v860_v58  ;;  %v862_v62 = vld [vmem:[#allocation4 + $0x20] sm:$0xff] (!%p1154_p5)  ;;  %v863_v63 = vld [vmem:[#allocation4 + $0x28] sm:$0xff] (!%p1154_p5)  ;;  %v864_v6 = vld [vmem:[#allocation4 + $0x30] sm:$0xff] (!%p1154_p5) }
 0x1a5   : > { %1261 = vmatpush3.bf16.xpose.msk.msra.mxu0 (!%p1154_p5), %vm1768_vm7, %v1259_v52  ;;  %v1267_v1 = vpack.c.bf16 (!%p1154_p5), %v863_v63, %v862_v62  ;;  %v876_v2 = vld [vmem:[#allocation2] sm:$0x1] (!%p1154_p5)  ;;  %v866_v13 = vld [vmem:[#allocation4 + $0x40] sm:$0xff] (!%p1154_p5)  ;;  %v867_v14 = vld [vmem:[#allocation4 + $0x48] sm:$0xff] (!%p1154_p5) }
 0x1a6   : > { %1262 = vmatprep.subr.bf16.mxu0 (!%p1154_p5), %v1417_v51  ;;  %v865_v7 = vld [vmem:[#allocation4 + $0x38] sm:$0xff] (!%p1154_p5)  ;;  %v1275_v4 = vpack.c.bf16 (!%p1154_p5), %v867_v14, %v866_v13  ;;  %v868_v53 = vld [vmem:[#allocation4 + $0x50] sm:$0xff] (!%p1154_p5)  ;;  %v870_v19 = vld [vmem:[#allocation4 + $0x60] sm:$0xff] (!%p1154_p5) }
 0x1a7   : > { %v880_v36 = vld [vmem:[#allocation3] sm:$0x1] (!%p1154_p5)  ;;  %v1271_v55 = vpack.c.bf16 (!%p1154_p5), %v865_v7, %v864_v6  ;;  %v885_v16 = vld [vmem:[%s1833_s5] sm:$0x1] (!%p1154_p5)  ;;  %v871_v17 = vld [vmem:[#allocation4 + $0x68] sm:$0xff] (!%p1154_p5) }
 0x1a8   : > { %s875_s28 = scvt.s32.f32 (!%p1154_p5), %s874_s11  ;;  %v869_v15 = vld [vmem:[#allocation4 + $0x58] sm:$0xff] (!%p1154_p5)  ;;  %v1283_v21 = vpack.c.bf16 (!%p1154_p5), %v871_v17, %v870_v19  ;;  %v872_v50 = vld [vmem:[#allocation4 + $0x70] sm:$0xff] (!%p1154_p5) }
 0x1a9   : > { %v1279_v49 = vpack.c.bf16 (!%p1154_p5), %v869_v15, %v868_v53  ;;  %v873_v22 = vld [vmem:[#allocation4 + $0x78] sm:$0xff] (!%p1154_p5)  ;;  %v895_v38 = vstv (!%p1154_p5), %s889_s15 }
 0x1aa   : > { %v877_v47 = vstv %s875_s28  ;;  %v1287_v23 = vpack.c.bf16 %v873_v22, %v872_v50 }
 0x1ab   : > { %1353 = vrcp.f32 %v877_v47 }
 0x1ad   : > { %1265 = vmatpush3.bf16.xpose.msk.msra.mxu0 %vm1768_vm7, %v1263_v61 }
 0x1ae   : > { %1266 = vmatprep.subr.bf16.mxu0 %v1417_v51 }
 0x1b5   : > { %1269 = vmatpush3.bf16.xpose.msk.msra.mxu0 %vm1768_vm7, %v1267_v1  ;;  %v1354_v3 = vpop.eup %1353 }
 0x1b6   : > { %1270 = vmatprep.subr.bf16.mxu0 %v1417_v51  ;;  %v879_v8 = vmul.f32 %v1354_v3, %v876_v2  ;;  %v881_v9 = vmul.f32 %v1354_v3, %v880_v36 }
 0x1b8   : > { %v882_v12 = vmul.f32 %v879_v8, %v879_v8 }
 0x1ba   : > { %v883_v40 = vsub.f32 %v881_v9, %v882_v12 }
 0x1bc   : > { %v884_v46 = vmax.f32 %v883_v40, 0.0 }
 0x1bd   : > { %1273 = vmatpush3.bf16.xpose.msk.msra.mxu0 %vm1768_vm7, %v1271_v55 }
 0x1be   : > { %1274 = vmatprep.subr.bf16.mxu0 %v1417_v51  ;;  %v886_v0 = vadd.f32 1e-05, %v884_v46 }
 0x1c0   : > { %1355 = vrsqrt.f32 %v886_v0 }
 0x1c5   : > { %1277 = vmatpush3.bf16.xpose.msk.msra.mxu0 %vm1768_vm7, %v1275_v4 }
 0x1c6   : > { %1278 = vmatprep.subr.bf16.mxu0 %v1417_v51 }
 0x1ca   : > { %v1356_v18 = vpop.eup %1355 }
 0x1cb   : > { %v888_v10 = vmul.f32 %v1356_v18, %v885_v16 }
 0x1cd   : > { %1281 = vmatpush3.bf16.xpose.msk.msra.mxu0 %vm1768_vm7, %v1279_v49  ;;  %v890_v11 = vmul.f32 %v888_v10, %v879_v8 }
 0x1ce   : > { %1282 = vmatprep.subr.bf16.mxu0 %v1417_v51 }
 0x1cf   : > { %v892_v20 = vsel %vm891_vm2, %v890_v11, 0.0 }
 0x1d0   : > { %893 = vadd.xlane.f32.xlu0 %v892_v20 }
 0x1d5   : > { %1285 = vmatpush3.bf16.xpose.msk.msra.mxu0 %vm1768_vm7, %v1283_v21 }
 0x1d6   : > { %1286 = vmatprep.subr.bf16.mxu0 %v1417_v51 }
 0x1dd   : > { %1289 = vmatpush3.bf16.xpose.msk.msra.mxu0 %vm1768_vm7, %v1287_v23 }
 0x1e4   : > { %1256 = vmatmul.mubr.msk.f32.vlgmr.msra.gmra.mrb[0].mxu0 %vm897_vm1, %v888_v10 }
 0x25d   : > { %v894_v24 = vpop.xlane.xlu0 %893 }
 0x25e   : > { %v896_v59 = vsub.f32 %v895_v38, %v894_v24 }
 0x2b7   : > { %v1015_v54 = vpop.f32.mrb[0].mxu0 }
 0x2b8   : > { %v1016_v25 = vadd.f32 %v1015_v54, %v896_v59  ;;  %v1257_v26 = vpop.f32.mrb[1].mxu0 }
 0x2ba   : > { %v1019_v27 = vsub.f32 0.0, %v1016_v25 }
 0x2bc   : > { %v1020_v28 = vmul.f32 1.442695, %v1019_v27 }
 0x2be   : > { %1357 = vpow2.f32 %v1020_v28 }
 0x2c8   : > { %v1358_v29 = vpop.eup %1357 }
 0x2c9   : > { %v1022_v30 = vadd.f32 1.0, %v1358_v29 }
 0x2cb   : > { %1359 = vrcp.f32 %v1022_v30 }
 0x2d5   : > { %v1360_v31 = vpop.eup %1359 }
 0x2d6   : > { %1025 = vst [vmem:[#allocation8] sm:$0x1] %v1360_v31 }
 0x2d7 PF: > { %p1794_p6 = scmp.eq.s32.totalorder %s1119_s0, 1  ;;  %s1420_s17 = smov [#allocation8]  }
 0x2d8   : > { %s1040_s13 = sshll.u32 %s1420_s17, 4  ;;  %s1041_s13 = int_to_ptr.vmem [resolvable:$true] %s1040_s13 }
 0x2d9   : > { %s1361_s18 = scalar_lea.vmem %s1041_s13, 16  ;;  %s1367_s19 = scalar_lea.vmem %s1041_s13, 32 }
 0x2da   : > { %p1362_p7 = scmp.ne.s32.totalorder %s1041_s13, %s1361_s18  ;;  %p1368_p10 = scmp.lt.s32.totalorder %s1041_s13, %s1041_s13 }
 0x2db   : > { %p1369_p11 = scmp.lt.s32.totalorder %s1367_s19, %s1361_s18 }
 0x2dc   : > { %p1363_p8 = pnand %p1362_p7, %p1794_p6 }
 0x2dd   : > { %p1370_p12 = por %p1369_p11, %p1368_p10 }
 0x2de   : > { %p1364_p9 = pneg %p1363_p8 }
 0x2e0   : > { %p1371_p13 = pnand %p1370_p12, %p1364_p9 }
 0x2e2   : > { %1374 = shalt.err (!%p1371_p13)
}
 0x2e3   : > { %s1375_s21 = scalar_lea.hbm %s1835_s7, 16 }
 0x2e4   : > { %p1376_p0 = scmp.ne.s32.totalorder %s1835_s7, %s1375_s21  ;;  %p1381_p3 = scmp.lt.u32.totalorder %s1375_s21, %s1835_s7 }
 0x2e6   : > { %p1377_p1 = pnand %p1376_p0, %p1794_p6 }
 0x2e8   : > { %p1378_p2 = pneg %p1377_p1 }
 0x2ea   : > { %p1383_p4 = pnand %p1381_p3, %p1378_p2 }
 0x2ec   : > { %1386 = shalt.err (!%p1383_p4)
}
 0x2ed   : > { %1295 = dma.vmem_to_hbm [thread:$0]  (%p1794_p6), %s1041_s13, 16, %s1835_s7, [#allocation9]  }
 0x2ee PF: > { %p1303_p5 = scmp.ge.s32.totalorder %s1413_s30, 2  ;;  %p1304_p7 = scmp.eq.s32.totalorder %s1120_s6, 1 }
 0x2f0   : > { %p1299_p8 = pnand %p1304_p7, %p1303_p5 }
 0x2f2   : > { %1400 = dma.done.wait (!%p1299_p8), [#allocation9], 16  }
 0x2f3   : > { %1402 = vsyncadd (!%p1299_p8), [#allocation9], 4294967280  ;;  %s22_s30 = sadd.s32 1, %s1413_s30   ;;  %s1839_s28 = smov %s1409_s29 }
 0x2f4   : > { %p19_p9 = scmp.ge.s32.totalorder %s22_s30, 4   ;;  %s1840_s29 = smov %s1842_s8 }
 0x2f6   :  { %21 = sbr.rel (!%p19_p9) target bundleno = 6 (0x6), region = 96 }
 0x2fd   :  { %1057 = vsyncpa [#allocation9], 1 }
 0x2fe   :  { %1059 = vsyncpa [#allocation9 + $0x1], 1 }

</bundles_post_ra>
